<compile_context>
chip_gen: v5e
topology: v5e:2x2
jax: 0.10.0
libtpu: 0.0.40
codegen_flags: <defaults>
</compile_context>

<pallas_src>
import functools

import jax
import jax.numpy as jnp
from jax.experimental import pallas as pl
from jax.experimental.pallas import tpu as pltpu

EPS = 1e-5   # BatchNorm eps
KH = 5       # conv kernel height
PAD = 2      # conv padding along H


def _attention_gate_kernel(w_ref, b_ref, x_ref, o_ref, *, h, w):
    # w_ref : SMEM (10,) f32 -- conv weights with BN scale folded in, [max taps | mean taps]
    # b_ref : SMEM (1,)  f32 -- folded BN shift
    # x_ref : VMEM (NB, C, H*W) block (native dtype)
    # o_ref : VMEM (NB, C, H*W) block
    hw = h * w
    x = x_ref[...]                                     # native dtype; no f32 copy of x
    nb = x.shape[0]

    # ---- ZPool over channels: only the small pooled maps are f32 ----
    x_max = jnp.max(x, axis=1).astype(jnp.float32)     # (NB, H*W)
    x_mean = jnp.mean(x, axis=1, dtype=jnp.float32)    # (NB, H*W)

    # ---- Conv2d(2,1,(5,1),pad=(2,0),bias=False) with folded BN shift ----
    # A shift of d rows along H is a rotation by d*W lanes in the flattened H*W axis
    # (pltpu.roll == jnp.roll, XLU).  The zero padding is realized by masking positions whose
    # source row h+d falls outside [0, H) with a lane-index compare -- no padded scratch
    # buffer, no per-step halo stores, no misaligned VMEM slices.
    lane = jax.lax.broadcasted_iota(jnp.int32, (nb, hw), 1)
    acc = w_ref[PAD] * x_max + w_ref[KH + PAD] * x_mean + b_ref[0]   # center tap (d = 0)
    for d in range(-PAD, PAD + 1):
        if d == 0:
            continue
        k = d + PAD                                    # tap index in the (5,1) kernel
        shift = (hw - d * w) % hw                      # roll so out[j] = in[j + d*w (mod hw)]
        if shift == 0:                                 # degenerate H <= PAD case
            rm, re = x_max, x_mean
        else:
            rm = pltpu.roll(x_max, shift, 1)
            re = pltpu.roll(x_mean, shift, 1)
        contrib = w_ref[k] * rm + w_ref[KH + k] * re
        if d > 0:
            valid = lane < (h - d) * w                 # source row h+d must be < H
        else:
            valid = lane >= (-d) * w                   # source row h+d must be >= 0
        acc = acc + jnp.where(valid, contrib, 0.0)

    # ---- sigmoid gate, broadcast over channels, gate multiply in native dtype ----
    scale = jax.nn.sigmoid(acc).astype(x.dtype)        # (NB, H*W)
    o_ref[...] = (x * scale[:, None, :]).astype(o_ref.dtype)


def attention_gate(x, conv_w, bn_gamma, bn_beta, bn_mean, bn_var,
                   *, max_block_bytes=None, donate_x=False):
    """x: (N, C, H, W); conv_w: (1, 2, 5, 1); BN params: (1,) each.  Eval-mode BN."""
    N, C, H, W = x.shape
    HW = H * W
    x_flat = x.reshape(N, C, HW)                       # lane-dense layout (free reshape)

    # Fold BatchNorm (inference, running stats) into the conv weights + a scalar shift.
    # TODO(synk): training-mode BN (batch statistics) not implemented; eval-mode only.
    a = bn_gamma.astype(jnp.float32) / jnp.sqrt(bn_var.astype(jnp.float32) + EPS)   # (1,)
    b = bn_beta.astype(jnp.float32) - bn_mean.astype(jnp.float32) * a               # (1,)
    # OIHW (1,2,5,1): input channel 0 = max taps, channel 1 = mean taps (ZPool concat order).
    w_scaled = conv_w.reshape(-1).astype(jnp.float32) * a[0]                        # (10,)

    # ---- per-generation VMEM budget / block sizing ----
    try:
        phys_vmem = int(pltpu.get_tpu_info().vmem_capacity_bytes)
    except Exception:                                  # conservative fallback (v7x-sized VMEM)
        phys_vmem = 64 << 20
    vmem_budget = min(phys_vmem // 2, 48 << 20)        # 32 MiB on v7x, 48 MiB on v5e/v6e
    if max_block_bytes is None:
        # Residency ~= 2x dbl-buffered input block + 2x output block + f32 pooled temps.
        max_block_bytes = vmem_budget // 6             # ~5 MiB (v7x) / 8 MiB (v5e/v6e) blocks

    per_sample = C * HW * x.dtype.itemsize
    nb = max(1, min(N, max_block_bytes // max(per_sample, 1)))
    if N >= 2:
        nb = min(nb, N // 2)                           # >= 2 grid steps -> both v7x TensorCores
    while N % nb:                                      # largest divisor of N under the cap
        nb -= 1
    grid = (N // nb,)
    # TODO(synk): when a single sample exceeds max_block_bytes, add H-tiling (second parallel
    # grid axis with a PAD-row halo) instead of the oversized nb=1 block; for now we just
    # raise the scoped VMEM limit so it still compiles.
    resident = 4 * nb * per_sample + 4 * nb * HW * 4   # dbl-buffered blocks + f32 temporaries
    vmem_limit = int(min(max(vmem_budget, resident + (8 << 20)),
                         max(phys_vmem - (2 << 20), 1 << 20)))

    cost = pl.CostEstimate(
        flops=int(N * HW * (3 * C + 22)),
        transcendentals=int(N * HW),
        bytes_accessed=int(2 * N * C * HW * x.dtype.itemsize),
    )

    kernel = functools.partial(_attention_gate_kernel, h=H, w=W)

    grid_spec = pltpu.PrefetchScalarGridSpec(
        num_scalar_prefetch=0,
        grid=grid,
        in_specs=[
            pl.BlockSpec(memory_space=pltpu.MemorySpace.SMEM),   # conv weights (BN-scaled)
            pl.BlockSpec(memory_space=pltpu.MemorySpace.SMEM),   # BN shift
            pl.BlockSpec((nb, C, HW), lambda n: (n, 0, 0)),      # x, NB batches / step
        ],
        out_specs=pl.BlockSpec((nb, C, HW), lambda n: (n, 0, 0)),
    )

    out_flat = pl.pallas_call(
        kernel,
        out_shape=jax.ShapeDtypeStruct((N, C, HW), x.dtype),
        grid_spec=grid_spec,
        compiler_params=pltpu.CompilerParams(
            dimension_semantics=("parallel",),
            vmem_limit_bytes=vmem_limit,
        ),
        cost_estimate=cost,
        # Operand 2 (x) can alias output 0 when the caller no longer needs x after gating.
        input_output_aliases={2: 0} if donate_x else {},
    )(w_scaled, b, x_flat)

    return out_flat.reshape(N, C, H, W)


def attention_gate_reference(x, conv_w, bn_gamma, bn_beta, bn_mean, bn_var):
    """Pure-JAX reference mirroring the PyTorch forward (BN in eval mode)."""
    x_max = jnp.max(x, axis=1, keepdims=True)
    x_mean = jnp.mean(x, axis=1, keepdims=True)
    comp = jnp.concatenate([x_max, x_mean], axis=1)            # (N, 2, H, W)
    conv = jax.lax.conv_general_dilated(
        comp, conv_w, window_strides=(1, 1),
        padding=((PAD, PAD), (0, 0)),
        dimension_numbers=("NCHW", "OIHW", "NCHW"))            # (N, 1, H, W)
    a = bn_gamma / jnp.sqrt(bn_var + EPS)
    b = bn_beta - bn_mean * a
    y = conv * a + b
    return x * jax.nn.sigmoid(y)


if __name__ == "__main__":
    key = jax.random.PRNGKey(0)
    kx, kw = jax.random.split(key)

    N, C, H, W = 2, 4, 16, 16
    x = jax.random.normal(kx, (N, C, H, W), dtype=jnp.float32)

    # Deterministic parameter init (Conv2d(2,1,(5,1),bias=False) + BatchNorm2d(1)).
    conv_w = jax.random.normal(kw, (1, 2, KH, 1), dtype=jnp.float32) * 0.1
    bn_gamma = jnp.ones((1,), jnp.float32)
    bn_beta = jnp.zeros((1,), jnp.float32)
    bn_mean = jnp.zeros((1,), jnp.float32)
    bn_var = jnp.ones((1,), jnp.float32)

    out = attention_gate(x, conv_w, bn_gamma, bn_beta, bn_mean, bn_var)
    out = jax.block_until_ready(out)

    ref = attention_gate_reference(x, conv_w, bn_gamma, bn_beta, bn_mean, bn_var)
    assert out.shape == (N, C, H, W)
    assert jnp.allclose(out, ref, atol=1e-5, rtol=1e-5), "mismatch vs reference"

    print("KERNEL_OK")
</pallas_src>

<mosaic_0001>
module attributes {stable_mosaic.version = 11 : i64} {
  func.func @_attention_gate_kernel(%arg0: i32, %arg1: memref<10xf32, #tpu.memory_space<smem>>, %arg2: memref<1xf32, #tpu.memory_space<smem>>, %arg3: memref<1x4x256xf32, #tpu.memory_space<vmem>>, %arg4: memref<1x4x256xf32, #tpu.memory_space<vmem>>) attributes {dimension_semantics = [#tpu.dimension_semantics<parallel>], iteration_bounds = array<i64: 2>, scalar_prefetch = 0 : i64, scratch_operands = 0 : i64, tpu.core_type = #tpu.core_type<tc>, window_params = [{transform_indices = @transform_0, window_bounds = array<i64: 10>}, {transform_indices = @transform_1, window_bounds = array<i64: 1>}, {transform_indices = @transform_2, window_bounds = array<i64: 1, 4, 256>}, {transform_indices = @transform_3, window_bounds = array<i64: 1, 4, 256>}]} {
    %c0 = arith.constant 0 : index
    %c0_0 = arith.constant 0 : index
    %c0_1 = arith.constant 0 : index
    %0 = vector.load %arg3[%c0, %c0_0, %c0_1] : memref<1x4x256xf32, #tpu.memory_space<vmem>>, vector<1x4x256xf32>
    %cst = arith.constant dense<0xFF800000> : vector<1x256xf32>
    %1 = vector.multi_reduction <maximumf>, %0, %cst [1] : vector<1x4x256xf32> to vector<1x256xf32>
    %cst_2 = arith.constant dense<0.000000e+00> : vector<1x256xf32>
    %2 = vector.multi_reduction <add>, %0, %cst_2 [1] : vector<1x4x256xf32> to vector<1x256xf32>
    %cst_3 = arith.constant 4.000000e+00 : f32
    %3 = vector.broadcast %cst_3 : f32 to vector<1x256xf32>
    %4 = arith.divf %2, %3 : vector<1x256xf32>
    %5 = tpu.iota {dimensions = array<i32: 1>} : vector<1x256xi32>
    %c2 = arith.constant 2 : index
    %6 = memref.load %arg1[%c2] : memref<10xf32, #tpu.memory_space<smem>>
    %7 = vector.broadcast %6 : f32 to vector<1x256xf32>
    %8 = arith.mulf %7, %1 : vector<1x256xf32>
    %c7 = arith.constant 7 : index
    %9 = memref.load %arg1[%c7] : memref<10xf32, #tpu.memory_space<smem>>
    %10 = vector.broadcast %9 : f32 to vector<1x256xf32>
    %11 = arith.mulf %10, %4 : vector<1x256xf32>
    %12 = arith.addf %8, %11 : vector<1x256xf32>
    %c0_4 = arith.constant 0 : index
    %13 = memref.load %arg2[%c0_4] : memref<1xf32, #tpu.memory_space<smem>>
    %14 = vector.broadcast %13 : f32 to vector<1x256xf32>
    %15 = arith.addf %12, %14 : vector<1x256xf32>
    %c32_i32 = arith.constant 32 : i32
    %16 = tpu.dynamic_rotate %1 by %c32_i32 dim 1 : vector<1x256xf32>, i32 -> vector<1x256xf32>
    %c32_i32_5 = arith.constant 32 : i32
    %17 = tpu.dynamic_rotate %4 by %c32_i32_5 dim 1 : vector<1x256xf32>, i32 -> vector<1x256xf32>
    %c0_6 = arith.constant 0 : index
    %18 = memref.load %arg1[%c0_6] : memref<10xf32, #tpu.memory_space<smem>>
    %19 = vector.broadcast %18 : f32 to vector<1x256xf32>
    %20 = arith.mulf %19, %16 : vector<1x256xf32>
    %c5 = arith.constant 5 : index
    %21 = memref.load %arg1[%c5] : memref<10xf32, #tpu.memory_space<smem>>
    %22 = vector.broadcast %21 : f32 to vector<1x256xf32>
    %23 = arith.mulf %22, %17 : vector<1x256xf32>
    %24 = arith.addf %20, %23 : vector<1x256xf32>
    %c32_i32_7 = arith.constant 32 : i32
    %25 = vector.broadcast %c32_i32_7 : i32 to vector<1x256xi32>
    %26 = arith.cmpi sge, %5, %25 : vector<1x256xi32>
    %cst_8 = arith.constant 0.000000e+00 : f32
    %27 = vector.broadcast %cst_8 : f32 to vector<1x256xf32>
    %28 = arith.select %26, %24, %27 : vector<1x256xi1>, vector<1x256xf32>
    %29 = arith.addf %15, %28 : vector<1x256xf32>
    %c16_i32 = arith.constant 16 : i32
    %30 = tpu.dynamic_rotate %1 by %c16_i32 dim 1 : vector<1x256xf32>, i32 -> vector<1x256xf32>
    %c16_i32_9 = arith.constant 16 : i32
    %31 = tpu.dynamic_rotate %4 by %c16_i32_9 dim 1 : vector<1x256xf32>, i32 -> vector<1x256xf32>
    %c1 = arith.constant 1 : index
    %32 = memref.load %arg1[%c1] : memref<10xf32, #tpu.memory_space<smem>>
    %33 = vector.broadcast %32 : f32 to vector<1x256xf32>
    %34 = arith.mulf %33, %30 : vector<1x256xf32>
    %c6 = arith.constant 6 : index
    %35 = memref.load %arg1[%c6] : memref<10xf32, #tpu.memory_space<smem>>
    %36 = vector.broadcast %35 : f32 to vector<1x256xf32>
    %37 = arith.mulf %36, %31 : vector<1x256xf32>
    %38 = arith.addf %34, %37 : vector<1x256xf32>
    %c16_i32_10 = arith.constant 16 : i32
    %39 = vector.broadcast %c16_i32_10 : i32 to vector<1x256xi32>
    %40 = arith.cmpi sge, %5, %39 : vector<1x256xi32>
    %cst_11 = arith.constant 0.000000e+00 : f32
    %41 = vector.broadcast %cst_11 : f32 to vector<1x256xf32>
    %42 = arith.select %40, %38, %41 : vector<1x256xi1>, vector<1x256xf32>
    %43 = arith.addf %29, %42 : vector<1x256xf32>
    %c240_i32 = arith.constant 240 : i32
    %44 = tpu.dynamic_rotate %1 by %c240_i32 dim 1 : vector<1x256xf32>, i32 -> vector<1x256xf32>
    %c240_i32_12 = arith.constant 240 : i32
    %45 = tpu.dynamic_rotate %4 by %c240_i32_12 dim 1 : vector<1x256xf32>, i32 -> vector<1x256xf32>
    %c3 = arith.constant 3 : index
    %46 = memref.load %arg1[%c3] : memref<10xf32, #tpu.memory_space<smem>>
    %47 = vector.broadcast %46 : f32 to vector<1x256xf32>
    %48 = arith.mulf %47, %44 : vector<1x256xf32>
    %c8 = arith.constant 8 : index
    %49 = memref.load %arg1[%c8] : memref<10xf32, #tpu.memory_space<smem>>
    %50 = vector.broadcast %49 : f32 to vector<1x256xf32>
    %51 = arith.mulf %50, %45 : vector<1x256xf32>
    %52 = arith.addf %48, %51 : vector<1x256xf32>
    %c240_i32_13 = arith.constant 240 : i32
    %53 = vector.broadcast %c240_i32_13 : i32 to vector<1x256xi32>
    %54 = arith.cmpi slt, %5, %53 : vector<1x256xi32>
    %cst_14 = arith.constant 0.000000e+00 : f32
    %55 = vector.broadcast %cst_14 : f32 to vector<1x256xf32>
    %56 = arith.select %54, %52, %55 : vector<1x256xi1>, vector<1x256xf32>
    %57 = arith.addf %43, %56 : vector<1x256xf32>
    %c224_i32 = arith.constant 224 : i32
    %58 = tpu.dynamic_rotate %1 by %c224_i32 dim 1 : vector<1x256xf32>, i32 -> vector<1x256xf32>
    %c224_i32_15 = arith.constant 224 : i32
    %59 = tpu.dynamic_rotate %4 by %c224_i32_15 dim 1 : vector<1x256xf32>, i32 -> vector<1x256xf32>
    %c4 = arith.constant 4 : index
    %60 = memref.load %arg1[%c4] : memref<10xf32, #tpu.memory_space<smem>>
    %61 = vector.broadcast %60 : f32 to vector<1x256xf32>
    %62 = arith.mulf %61, %58 : vector<1x256xf32>
    %c9 = arith.constant 9 : index
    %63 = memref.load %arg1[%c9] : memref<10xf32, #tpu.memory_space<smem>>
    %64 = vector.broadcast %63 : f32 to vector<1x256xf32>
    %65 = arith.mulf %64, %59 : vector<1x256xf32>
    %66 = arith.addf %62, %65 : vector<1x256xf32>
    %c224_i32_16 = arith.constant 224 : i32
    %67 = vector.broadcast %c224_i32_16 : i32 to vector<1x256xi32>
    %68 = arith.cmpi slt, %5, %67 : vector<1x256xi32>
    %cst_17 = arith.constant 0.000000e+00 : f32
    %69 = vector.broadcast %cst_17 : f32 to vector<1x256xf32>
    %70 = arith.select %68, %66, %69 : vector<1x256xi1>, vector<1x256xf32>
    %71 = arith.addf %57, %70 : vector<1x256xf32>
    %72 = arith.negf %71 : vector<1x256xf32>
    %73 = math.exp %72 : vector<1x256xf32>
    %cst_18 = arith.constant 1.000000e+00 : f32
    %74 = vector.broadcast %cst_18 : f32 to vector<1x256xf32>
    %75 = arith.addf %74, %73 : vector<1x256xf32>
    %76 = arith.divf %74, %75 : vector<1x256xf32>
    %77 = vector.shape_cast %76 : vector<1x256xf32> to vector<1x1x256xf32>
    %78 = vector.broadcast %77 : vector<1x1x256xf32> to vector<1x4x256xf32>
    %79 = arith.mulf %0, %78 : vector<1x4x256xf32>
    %c0_19 = arith.constant 0 : index
    %c0_20 = arith.constant 0 : index
    %c0_21 = arith.constant 0 : index
    %80 = vector.load %arg4[%c0_19, %c0_20, %c0_21] : memref<1x4x256xf32, #tpu.memory_space<vmem>>, vector<1x4x256xf32>
    tpu.vector_store %arg4[%c0_19, %c0_20, %c0_21], %79 {strides = array<i32>} : memref<1x4x256xf32, #tpu.memory_space<vmem>>, vector<1x4x256xf32>,
    return
  }
  func.func @transform_0(%arg0: i32) -> i32 {
    %c0_i32 = arith.constant 0 : i32
    %c0_i32_0 = arith.constant 0 : i32
    return %c0_i32 : i32
  }
  func.func @transform_1(%arg0: i32) -> i32 {
    %c0_i32 = arith.constant 0 : i32
    %c0_i32_0 = arith.constant 0 : i32
    return %c0_i32 : i32
  }
  func.func @transform_2(%arg0: i32) -> (i32, i32, i32) {
    %c0_i32 = arith.constant 0 : i32
    %c0_i32_0 = arith.constant 0 : i32
    %c0_i32_1 = arith.constant 0 : i32
    return %arg0, %c0_i32, %c0_i32_0 : i32, i32, i32
  }
  func.func @transform_3(%arg0: i32) -> (i32, i32, i32) {
    %c0_i32 = arith.constant 0 : i32
    %c0_i32_0 = arith.constant 0 : i32
    %c0_i32_1 = arith.constant 0 : i32
    return %arg0, %c0_i32, %c0_i32_0 : i32, i32, i32
  }
}

</mosaic_0001>

<bundles_post_ra>
// kernel: tpu_custom_call.1
= control target key start
LH: loop header
LB: loop body
LE: loop exit
PB: predicated region body
PF: predicated region fallthrough
CT: control target
= control target key end

     0   :  { %s1010_s0 = inlined_call_operand.vmem [shape: f32[10], index: 0, kind: input, shape index: {}]   ;;  %s1011_s1 = inlined_call_operand.<no memory space> [shape: f32[1], index: 1, kind: input, shape index: {}]   ;;  %s1012_s2 = inlined_call_operand.hbm [shape: f32[2,4,256], index: 2, kind: input, shape index: {}]   ;;  %s1013_s3 = inlined_call_operand.hbm [shape: f32[2,4,256], index: 3, kind: output, shape index: {}]  }
   0x1   :  { %8 = sst [smem:[#allocation2]] %s1011_s1 }
   0x2   :  { %9 = vsyncpa [#allocation6], 0 }
   0x3   :  { %10 = vsyncpa [#allocation4], 0 }
   0x4   :  { %12 = vsyncpa [#allocation4 + $0x1], 0 }
   0x5   :  { %13 = vsyncpa [#allocation5], 0 }
   0x6   :  { %15 = vsyncpa [#allocation5 + $0x1], 0  ;;  %s780_s14 = smov 0   ;;  %s782_s15 = smov 0  }
   0x7   :  { %s784_s16 = smov 0   ;;  %s786_s17 = smov 0  }
   0x8 LB: > { %s801_s1 = sadd.s32 4294967295, %s749_s17   ;;  %s533_s18 = sadd.s32 4294967294, %s749_s17   ;;  %s749_s17 = sphi %s786_s17, %s1023_s17   ;;  %s745_s16 = sphi %s784_s16, %s1022_s16   ;;  %s741_s15 = sphi %s782_s15, %s1021_s15   ;;  %s737_s14 = sphi %s780_s14, %s1020_s14  }
   0x9   : > { %p83_p0 = scmp.ne.s32.totalorder %s741_s15, %s737_s14  ;;  %p84_p1 = scmp.eq.s32.totalorder %s801_s1, 0 }
   0xa   : > { %p107_p2 = scmp.eq.s32.totalorder %s801_s1, 1  ;;  %p113_p3 = scmp.eq.s32.totalorder %s533_s18, 1 }
   0xb   : > { %p810_p4 = por %p84_p1, %p83_p0  ;;  %p534_p5 = scmp.ge.s32.totalorder %s749_s17, 1 }
   0xc   : > { %p815_p6 = por %p113_p3, %p83_p0  ;;  %p120_p7 = scmp.lt.s32.totalorder %s749_s17, 3 }
   0xd   : > { %s132_s23 = sshll.u32 %s1010_s0, 4  ;;  %s831_s25 = sadd.s32 1, %s749_s17   ;;  %s133_s23 = int_to_ptr.vmem [resolvable:$true] %s132_s23 }
   0xe   : > { %p823_p8 = pnand %p534_p5, %p120_p7  ;;  %s67_s26 = ssub.s32 %s749_s17, %s831_s25 }
   0xf   : > { %p68_p12 = scmp.eq.s32.totalorder %s67_s26, 0  ;;  %s70_s27 = sadd.s32 1, %s745_s16 }
  0x10   : > { %p570_p10 = pneg %p823_p8  ;;  %p77_p13 = scmp.ne.s32.totalorder %s745_s16, %s741_s15 }
  0x11   : > { %s751_s28 = smov [#allocation3]   ;;  %p78_p0 = scmp.eq.s32.totalorder %s749_s17, 0 }
  0x12   : > { %p571_p11 = pnand %p570_p10, %p84_p1  ;;  %p846_p3 = por %p107_p2, %p77_p13 }
  0x13   : > { %s841_s29 = scalar_select %p68_p12, %s745_s16, %s70_s27  }
  0x14   : > { %573 = dma.vmem_to_smem (!%p571_p11), %s133_s23, 16, %s751_s28, [#allocation6]  }
  0x15   : > { %s146_s4 = sand.u32 1, %s745_s16   ;;  %p79_p5 = por %p78_p0, %p77_p13 }
  0x16   : > { %p583_p7 = scmp.lt.s32.totalorder %s749_s17, 2  ;;  %s537_s5 = sshll.u32 %s146_s4, 3 }
  0x17   : > { %s560_s6 = sshll.u32 %s749_s17, 3  ;;  %s150_s11 = scalar_lea.vmem [#allocation7], %s537_s5 }
  0x18   : > { %s155_s9 = scalar_lea.hbm %s1012_s2, %s560_s6  ;;  %s159_s12 = sshll.u32 %s150_s11, 4  ;;  %s160_s12 = int_to_ptr.vmem [resolvable:$true] %s159_s12 }
  0x19   : > { %s157_s10 = sshll.u32 %s155_s9, 4  ;;  %p856_p10 = pnand %p583_p7, %p79_p5  ;;  %s158_s10 = int_to_ptr.hbm [resolvable:$true] %s157_s10 }
  0x1a   : > { %s147_s18 = scalar_lea.sflag [#allocation4], %s146_s4  ;;  %s649_s21 = sshra.s32 %s158_s10, 4  ;;  %s650_s21 = int_to_ptr.hbm [resolvable:$true] %s649_s21 }
  0x1b   : > { %s651_s22 = scalar_lea.hbm %s650_s21, 8  ;;  %p653_p11 = pneg %p856_p10 }
  0x1c   : > { %p652_p2 = scmp.ne.s32.totalorder %s650_s21, %s651_s22  ;;  %s656_s27 = scalar_lea.hbm %s1012_s2, 16 }
  0x1d   : > { %p657_p0 = scmp.lt.s32.totalorder %s650_s21, %s1012_s2  ;;  %p658_p5 = scmp.lt.s32.totalorder %s656_s27, %s651_s22 }
  0x1e   : > { %p654_p12 = pnand %p653_p11, %p652_p2 }
  0x1f   : > { %p659_p7 = por %p658_p5, %p657_p0 }
  0x20   : > { %p655_p13 = pneg %p654_p12 }
  0x22   : > { %p660_p9 = pnand %p659_p7, %p655_p13 }
  0x24   : > { %663 = shalt.err (!%p660_p9)
}
  0x25   : > { %577 = dma.hbm_to_vmem [thread:$0]  (!%p856_p10), %s158_s10, 128, %s160_s12, %s147_s18  }
  0x26   : > { %168 = sbr.rel (%p823_p8) target bundleno = 275 (0x113), region = 32 }
  0x2b   : > { %724 = dma.done.wait (%p84_p1), [#allocation6], 16  }
  0x2c   : > { %726 = vsyncadd (%p84_p1), [#allocation6], 4294967280  ;;  %s877_s4 = sand.u32 1, %s741_s15  }
  0x2d   : > { %s542_s6 = sshll.u32 %s877_s4, 3  ;;  %s176_s7 = scalar_lea.sflag [#allocation4], %s877_s4 }
  0x2e   : > { %s179_s8 = scalar_lea.vmem [#allocation7], %s542_s6 }
  0x2f   : > { %728 = dma.done.wait (%p810_p4), %s176_s7, 128  }
  0x30   : > { %730 = vsyncadd (%p810_p4), %s176_s7, 4294967168 }
  0x31   : > { %185 = sfence }
  0x32   : > { %v887_v0 = vld [vmem:[%s179_s8] sm:$0xff]  ;;  %v752_v1 = vmov 4.0   ;;  %vm211_vm0 = vcmask 1043456   ;;  %s753_s19 = smov 32   ;;  %s754_s24 = smov 16   ;;  %v254_v48 = vlaneseq }
  0x33   : > { %206 = vst [vmem:[#allocation1] ss:$2 sm:$0xff] %v887_v0  ;;  %624 = vrcp.f32 %v752_v1  ;;  %s755_s9 = smov 112   ;;  %s756_s10 = smov 96  }
  0x34   : > { %s544_s11 = sld [smem:[#allocation3 + $0x2]]  ;;  %v903_v51 = vand.u32 127, %v254_v48  ;;  %s561_s7 = sshll.u32 %s801_s1, 3 }
  0x35   : > { %s545_s12 = sld [smem:[#allocation3 + $0x7]]  ;;  %s203_s1 = scalar_lea.vmem [#allocation8], %s542_s6 }
  0x36   : > { %s897_s13 = sld [smem:[#allocation3]]  ;;  %vm304_vm2 = vcmp.lt.s32.totalorder %v903_v51, 16  ;;  %vm275_vm3 = vcmp.lt.s32.totalorder %v903_v51, 32  ;;  %vm294_vm4 = vcmp.ge.s32.totalorder %v903_v51, 32  ;;  %vm333_vm5 = vcmp.lt.s32.totalorder %v903_v51, 112  ;;  %s699_s6 = scalar_lea.hbm %s1013_s3, 16 }
  0x37   : > { %s899_s18 = sld [smem:[#allocation3 + $0x5]]  ;;  %vm323_vm6 = vcmp.ge.s32.totalorder %v903_v51, 16  ;;  %vm362_vm7 = vcmp.lt.s32.totalorder %v903_v51, 96 }
  0x38   : > { %s901_s21 = sld [smem:[#allocation3 + $0x1]] }
  0x39   : > { %v625_v2 = vpop.eup %624  ;;  %s905_s22 = sld [smem:[#allocation2]] }
  0x3a   : > { %v207_v3 = vld.sshfl [vmem:[#allocation1] sm:$0xff pattern:$0x75316420]  ;;  %v208_v4 = vld.sshfl [vmem:[#allocation1 + $0x8] sm:$0xff pattern:$0x75316420]  ;;  %vm250_vm1 = vweird.f32 %v625_v2  ;;  %v258_v52 = vstv %s544_s11 }
  0x3b   : > { %v212_v5 = vsel %vm211_vm0, %v207_v3, -inf  ;;  %v219_v6 = vsel %vm211_vm0, %v208_v4, -inf  ;;  %226 = vst [vmem:[#allocation1] ss:$2 sm:$0xff] %v887_v0  ;;  %v246_v9 = vmul.f32 4.0, %v625_v2  ;;  %v262_v53 = vstv %s545_s12  ;;  %s907_s23 = sld [smem:[#allocation3 + $0x6]] }
  0x3c   : > { %v213_v7 = vrot.slane %v212_v5, 4  ;;  %v220_v8 = vrot.slane %v219_v6, 4  ;;  %s912_s26 = sld [smem:[#allocation3 + $0x8]]  ;;  %v285_v60 = vstv %s897_s13  ;;  %s435_s11 = scalar_lea.sflag [#allocation5], %s877_s4 }
  0x3d   : > { %v247_v14 = vsub.f32 1.0, %v246_v9  ;;  %v289_v55 = vstv %s899_s18  ;;  %s918_s27 = sld [smem:[#allocation3 + $0x3]] }
  0x3e   : > { %v214_v10 = vmax.f32 %v212_v5, %v213_v7  ;;  %v221_v11 = vmax.f32 %v219_v6, %v220_v8  ;;  %v314_v61 = vstv %s901_s21  ;;  %s934_s28 = sld [smem:[#allocation3 + $0x9]] }
  0x3f   : > { %v248_v24 = vmul.f32 %v625_v2, %v247_v14  ;;  %v268_v7 = vstv %s905_s22  ;;  %s943_s5 = sld [smem:[#allocation3 + $0x4]] }
  0x40   : > { %v215_v12 = vrot.slane %v214_v10, 2  ;;  %v222_v13 = vrot.slane %v221_v11, 2 }
  0x41   : > { %v249_v31 = vadd.f32 %v625_v2, %v248_v24 }
  0x42   : > { %v216_v15 = vmax.f32 %v214_v10, %v215_v12  ;;  %v227_v16 = vld.sshfl [vmem:[#allocation1] sm:$0xff pattern:$0x75316420]  ;;  %v228_v17 = vld.sshfl [vmem:[#allocation1 + $0x8] sm:$0xff pattern:$0x75316420]  ;;  %v223_v21 = vmax.f32 %v221_v11, %v222_v13  ;;  %v318_v13 = vstv %s907_s23 }
  0x43   : > { %v231_v18 = vsel %vm211_vm0, %v227_v16, 0.0  ;;  %v238_v19 = vsel %vm211_vm0, %v228_v17, 0.0  ;;  %v251_v36 = vsel %vm250_vm1, %v625_v2, %v249_v31  ;;  %v347_v16 = vstv %s912_s26 }
  0x44   : > { %v217_v20 = vrot.slane %v216_v15, 1  ;;  %v232_v22 = vrot.slane %v231_v18, 4  ;;  %v239_v23 = vrot.slane %v238_v19, 4  ;;  %v224_v28 = vrot.slane %v223_v21, 1 }
  0x45   : > { %v256_v31 = vadd.s32 128, %v903_v51 }
  0x46   : > { %v218_v25 = vmax.f32 %v216_v15, %v217_v20  ;;  %v233_v26 = vadd.f32 %v232_v22, %v231_v18  ;;  %v240_v27 = vadd.f32 %v239_v23, %v238_v19  ;;  %v225_v34 = vmax.f32 %v223_v21, %v224_v28 }
  0x47   : > { %v343_v23 = vstv %s918_s27  ;;  %vm353_vm8 = vcmp.lt.s32.totalorder %v256_v31, 240  ;;  %vm382_vm9 = vcmp.lt.s32.totalorder %v256_v31, 224 }
  0x48   : > { %271 = vrot.lane.b32.xlu0 %v218_v25, %s753_s19  ;;  %v234_v29 = vrot.slane %v233_v26, 2  ;;  %v241_v30 = vrot.slane %v240_v27, 2  ;;  %300 = vrot.lane.b32.xlu2 %v218_v25, %s754_s24  ;;  %v259_v56 = vmul.f32 %v258_v52, %v218_v25  ;;  %v260_v2 = vmul.f32 %v258_v52, %v225_v34 }
  0x4a   : > { %v235_v32 = vadd.f32 %v234_v29, %v233_v26  ;;  %v242_v33 = vadd.f32 %v241_v30, %v240_v27 }
  0x4c   : > { %v236_v35 = vrot.slane %v235_v32, 1  ;;  %v243_v38 = vrot.slane %v242_v33, 1 }
  0x4e   : > { %v237_v37 = vadd.f32 %v236_v35, %v235_v32  ;;  %v244_v40 = vadd.f32 %v243_v38, %v242_v33 }
  0x50   : > { %273 = vrot.lane.b32.xlu0 %v225_v34, %s753_s19  ;;  %v252_v39 = vmul.f32 %v251_v36, %v237_v37  ;;  %302 = vrot.lane.b32.xlu2 %v225_v34, %s754_s24  ;;  %v253_v41 = vmul.f32 %v251_v36, %v244_v40 }
  0x52   : > { %278 = vrot.lane.b32.xlu1 %v252_v39, %s753_s19  ;;  %v263_v57 = vmul.f32 %v262_v53, %v252_v39  ;;  %v264_v3 = vmul.f32 %v262_v53, %v253_v41 }
  0x54   : > { %v265_v8 = vadd.f32 %v263_v57, %v259_v56  ;;  %v266_v14 = vadd.f32 %v264_v3, %v260_v2 }
  0x56   : > { %v269_v22 = vadd.f32 %v268_v7, %v265_v8  ;;  %v270_v33 = vadd.f32 %v268_v7, %v266_v14 }
  0x58   : > { %331 = vrot.lane.b32.xlu0 %v225_v34, %s755_s9  ;;  %329 = vrot.lane.b32.xlu2 %v218_v25, %s755_s9 }
  0x5a   : > { %280 = vrot.lane.b32.xlu1 %v253_v41, %s753_s19 }
  0x60   : > { %358 = vrot.lane.b32.xlu0 %v218_v25, %s756_s10  ;;  %338 = vrot.lane.b32.xlu2 %v253_v41, %s755_s9 }
  0x62   : > { %309 = vrot.lane.b32.xlu1 %v253_v41, %s754_s24 }
  0x68   : > { %307 = vrot.lane.b32.xlu0 %v252_v39, %s754_s24  ;;  %365 = vrot.lane.b32.xlu2 %v252_v39, %s756_s10  ;;  %s446_s24 = scalar_lea.hbm %s1013_s3, %s561_s7 }
  0x6a   : > { %336 = vrot.lane.b32.xlu1 %v252_v39, %s755_s9  ;;  %s448_s9 = sshll.u32 %s203_s1, 4  ;;  %s449_s9 = int_to_ptr.vmem [resolvable:$true] %s448_s9 }
  0x70   : > { %367 = vrot.lane.b32.xlu0 %v253_v41, %s756_s10 }
  0x72   : > { %360 = vrot.lane.b32.xlu1 %v225_v34, %s756_s10  ;;  %s450_s10 = sshll.u32 %s446_s24, 4  ;;  %s451_s10 = int_to_ptr.hbm [resolvable:$true] %s450_s10 }
  0x73   : > { %s693_s12 = sshra.s32 %s451_s10, 4  ;;  %s694_s12 = int_to_ptr.hbm [resolvable:$true] %s693_s12 }
  0x74   : > { %s695_s13 = scalar_lea.hbm %s694_s12, 8  ;;  %p700_p9 = scmp.lt.s32.totalorder %s694_s12, %s1013_s3 }
  0x75   : > { %p696_p1 = scmp.ne.s32.totalorder %s694_s12, %s695_s13  ;;  %p701_p10 = scmp.lt.s32.totalorder %s699_s6, %s695_s13 }
  0x77   : > { %p697_p4 = pnand %p696_p1, %p846_p3  ;;  %p702_p2 = por %p701_p10, %p700_p9 }
  0x79   : > { %p698_p8 = pneg %p697_p4 }
  0x7b   : > { %p703_p11 = pnand %p702_p2, %p698_p8 }
  0xa2   : > { %v301_v43 = vpop.permute.xlu2 %300 }
  0xaa   : > { %v303_v46 = vpop.permute.xlu2 %302 }
  0xab   : > { %v306_v62 = vsel %vm304_vm2, %v303_v46, %v301_v43  ;;  %v305_v1 = vsel %vm304_vm2, %v301_v43, %v303_v46 }
  0xac   : > { %v315_v6 = vmul.f32 %v314_v61, %v306_v62  ;;  %v316_v12 = vmul.f32 %v314_v61, %v305_v1 }
  0xb2   : > { %v330_v50 = vpop.permute.xlu2 %329 }
  0xba   : > { %v272_v42 = vpop.permute.xlu0 %271  ;;  %v339_v4 = vpop.permute.xlu2 %338 }
  0xc2   : > { %v274_v44 = vpop.permute.xlu0 %273  ;;  %v366_v39 = vpop.permute.xlu2 %365 }
  0xc3   : > { %v277_v63 = vsel %vm275_vm3, %v274_v44, %v272_v42  ;;  %v276_v10 = vsel %vm275_vm3, %v272_v42, %v274_v44  ;;  %v376_v42 = vstv %s934_s28 }
  0xc4   : > { %v279_v45 = vpop.permute.xlu1 %278  ;;  %v286_v11 = vmul.f32 %v285_v60, %v277_v63  ;;  %v287_v21 = vmul.f32 %v285_v60, %v276_v10 }
  0xca   : > { %v895_v47 = vpop.permute.xlu0 %331 }
  0xcb   : > { %v335_v26 = vsel %vm333_vm5, %v895_v47, %v330_v50  ;;  %v334_v36 = vsel %vm333_vm5, %v330_v50, %v895_v47 }
  0xcc   : > { %v281_v49 = vpop.permute.xlu1 %280  ;;  %v345_v37 = vmul.f32 %v343_v23, %v335_v26  ;;  %v344_v44 = vmul.f32 %v343_v23, %v334_v36 }
  0xcd   : > { %v283_v58 = vsel %vm275_vm3, %v281_v49, %v279_v45  ;;  %v282_v9 = vsel %vm275_vm3, %v279_v45, %v281_v49  ;;  %v372_v49 = vstv %s943_s5 }
  0xce   : > { %v290_v5 = vmul.f32 %v289_v55, %v283_v58  ;;  %v291_v17 = vmul.f32 %v289_v55, %v282_v9 }
  0xd0   : > { %v292_v18 = vadd.f32 %v290_v5, %v286_v11  ;;  %v293_v34 = vadd.f32 %v291_v17, %v287_v21 }
  0xd2   : > { %v910_v54 = vpop.permute.xlu0 %358  ;;  %v296_v35 = vsel %vm294_vm4, %v292_v18, 0.0  ;;  %v299_v48 = vadd.f32 %v293_v34, %v270_v33 }
  0xd3   : > { %v298_v43 = vadd.f32 %v296_v35, %v269_v22 }
  0xd4   : > { %v310_v59 = vpop.permute.xlu1 %309 }
  0xda   : > { %v308_v15 = vpop.permute.xlu0 %307 }
  0xdb   : > { %v311_v19 = vsel %vm304_vm2, %v308_v15, %v310_v59  ;;  %v312_v20 = vsel %vm304_vm2, %v310_v59, %v308_v15 }
  0xdc   : > { %v319_v24 = vmul.f32 %v318_v13, %v312_v20  ;;  %v337_v25 = vpop.permute.xlu1 %336  ;;  %v320_v27 = vmul.f32 %v318_v13, %v311_v19 }
  0xdd   : > { %v340_v28 = vsel %vm333_vm5, %v337_v25, %v339_v4  ;;  %v341_v29 = vsel %vm333_vm5, %v339_v4, %v337_v25 }
  0xde   : > { %v321_v30 = vadd.f32 %v319_v24, %v315_v6  ;;  %v349_v32 = vmul.f32 %v347_v16, %v341_v29  ;;  %v348_v38 = vmul.f32 %v347_v16, %v340_v28  ;;  %v322_v40 = vadd.f32 %v320_v27, %v316_v12 }
  0xe0   : > { %v325_v41 = vsel %vm323_vm6, %v321_v30, 0.0  ;;  %v351_v45 = vadd.f32 %v349_v32, %v345_v37  ;;  %v350_v53 = vadd.f32 %v348_v38, %v344_v44  ;;  %v328_v58 = vadd.f32 %v322_v40, %v299_v48 }
  0xe1   : > { %v327_v50 = vadd.f32 %v325_v41, %v298_v43 }
  0xe2   : > { %v368_v46 = vpop.permute.xlu0 %367  ;;  %v355_v61 = vsel %vm353_vm8, %v351_v45, 0.0 }
  0xe3   : > { %v369_v52 = vsel %vm362_vm7, %v366_v39, %v368_v46  ;;  %v370_v47 = vsel %vm362_vm7, %v368_v46, %v366_v39  ;;  %v356_v1 = vadd.f32 %v350_v53, %v327_v50  ;;  %v357_v4 = vadd.f32 %v355_v61, %v328_v58 }
  0xe4   : > { %v361_v55 = vpop.permute.xlu1 %360  ;;  %v377_v56 = vmul.f32 %v376_v42, %v369_v52  ;;  %v378_v57 = vmul.f32 %v376_v42, %v370_v47 }
  0xe5   : > { %v363_v59 = vsel %vm362_vm7, %v910_v54, %v361_v55  ;;  %v364_v60 = vsel %vm362_vm7, %v361_v55, %v910_v54 }
  0xe6   : > { %v373_v62 = vmul.f32 %v372_v49, %v363_v59  ;;  %v374_v63 = vmul.f32 %v372_v49, %v364_v60 }
  0xe8   : > { %v379_v2 = vadd.f32 %v377_v56, %v373_v62  ;;  %v380_v3 = vadd.f32 %v378_v57, %v374_v63 }
  0xea   : > { %v384_v5 = vsel %vm382_vm9, %v380_v3, 0.0  ;;  %v385_v6 = vadd.f32 %v379_v2, %v356_v1 }
  0xeb   : > { %v386_v7 = vadd.f32 %v384_v5, %v357_v4 }
  0xec   : > { %v553_v8 = vmul.f32 -1.442695, %v385_v6 }
  0xed   : > { %v554_v9 = vmul.f32 -1.442695, %v386_v7 }
  0xee   : > { %626 = vpow2.f32 %v553_v8 }
  0xef   : > { %628 = vpow2.f32 %v554_v9 }
  0xf4   : > { %v627_v10 = vpop.eup %626 }
  0xf5   : > { %v629_v11 = vpop.eup %628  ;;  %v393_v12 = vadd.f32 1.0, %v627_v10 }
  0xf6   : > { %v394_v51 = vadd.f32 1.0, %v629_v11 }
  0xf7   : > { %630 = vrcp.f32 %v393_v12  ;;  %v406_v19 = vand.u32 2147483648, %v393_v12  ;;  %v404_v21 = vand.u32 2147483647, %v393_v12  ;;  %vm400_vm12 = vweird.f32 %v393_v12 }
  0xf8   : > { %632 = vrcp.f32 %v394_v51  ;;  %v421_v20 = vand.u32 2147483648, %v394_v51  ;;  %v419_v23 = vand.u32 2147483647, %v394_v51  ;;  %vm415_vm14 = vweird.f32 %v394_v51 }
  0xf9   : > { %v407_v27 = vor.u32 1.1754944e-38, %v406_v19  ;;  %vm405_vm1 = vcmp.eq.f32.partialorder %v404_v21, 8.507059e+37 }
  0xfa   : > { %v422_v28 = vor.u32 1.1754944e-38, %v421_v20  ;;  %vm420_vm2 = vcmp.eq.f32.partialorder %v419_v23, 8.507059e+37 }
  0xfd   : > { %v631_v54 = vpop.eup %630 }
  0xfe   : > { %v633_v13 = vpop.eup %632  ;;  %v396_v14 = vmul.f32 %v631_v54, %v393_v12  ;;  %vm401_vm10 = vweird.f32 %v631_v54 }
  0xff   : > { %v411_v15 = vmul.f32 %v633_v13, %v394_v51  ;;  %vm416_vm11 = vweird.f32 %v633_v13  ;;  %vm402_vm13 = vmor %vm400_vm12, %vm401_vm10 }
 0x100   : > { %v397_v16 = vsub.f32 1.0, %v396_v14  ;;  %vm417_vm15 = vmor %vm415_vm14, %vm416_vm11 }
 0x101   : > { %v412_v17 = vsub.f32 1.0, %v411_v15 }
 0x102   : > { %v398_v18 = vmul.f32 %v631_v54, %v397_v16 }
 0x103   : > { %v413_v22 = vmul.f32 %v633_v13, %v412_v17 }
 0x104   : > { %v399_v24 = vadd.f32 %v631_v54, %v398_v18 }
 0x105   : > { %v414_v25 = vadd.f32 %v633_v13, %v413_v22 }
 0x106   : > { %v403_v26 = vsel %vm402_vm13, %v631_v54, %v399_v24 }
 0x107   : > { %v418_v29 = vsel %vm417_vm15, %v633_v13, %v414_v25  ;;  %v408_v30 = vsel %vm405_vm1, %v407_v27, %v403_v26 }
 0x108   : > { %v423_v31 = vsel %vm420_vm2, %v422_v28, %v418_v29  ;;  %v425_v33 = vperm.slane %v408_v30, 0 }
 0x109   : > { %v426_v32 = vperm.slane %v423_v31, 0 }
 0x10b   : > { %v429_v34 = vrot.slane %v426_v32, 4 }
 0x10d   : > { %v430_v35 = vsel %vm211_vm0, %v425_v33, %v429_v34 }
 0x10e   : > { %v432_v36 = vmul.f32 %v430_v35, %v887_v0 }
 0x110   : > { %433 = vst [vmem:[%s203_s1] sm:$0xff] %v432_v36 }
 0x111   : > { %706 = shalt.err (!%p703_p11)
}
 0x112   : > { %568 = dma.vmem_to_hbm [thread:$0]  (%p846_p3), %s449_s9, 128, %s451_s10, %s435_s11  }
 0x113 PF: > { %s462_s4 = sand.u32 1, %s737_s14   ;;  %p1019_p12 = scmp.ge.s32.totalorder %s749_s17, 2 }
 0x114   : > { %s463_s26 = scalar_lea.sflag [#allocation5], %s462_s4 }
 0x115   : > { %p579_p13 = pnand %p1019_p12, %p815_p6 }
 0x117   : > { %p580_p0 = pneg %p579_p13 }
 0x119   : > { %732 = dma.done.wait (%p580_p0), %s463_s26, 128  }
 0x11a   : > { %734 = vsyncadd (%p580_p0), %s463_s26, 4294967168  ;;  %p18_p5 = scmp.ge.s32.totalorder %s831_s25, 4   ;;  %s1020_s14 = smov %s741_s15 }
 0x11b   : > { %s1021_s15 = smov %s745_s16  ;;  %s1022_s16 = smov %s841_s29 }
 0x11c   : > { %s1023_s17 = smov %s831_s25  ;;  %20 = sbr.rel (!%p18_p5) target bundleno = 8 (0x8), region = 82 }
 0x121   :  { %469 = vsyncpa [#allocation4], 1 }
 0x122   :  { %471 = vsyncpa [#allocation4 + $0x1], 1 }
 0x123   :  { %472 = vsyncpa [#allocation5], 1 }
 0x124   :  { %474 = vsyncpa [#allocation5 + $0x1], 1 }
 0x125   :  { %475 = vsyncpa [#allocation6], 1 }
 0x126   :  { %477 = vsyncpa [#allocation6 + $0x1], 1 }

</bundles_post_ra>
